<compile_context>
chip_gen: v7x
topology: tpu7x:2x2x1
jax: 0.10.0
libtpu: 0.0.40
codegen_flags: <defaults>
</compile_context>

<pallas_src>
import functools

import jax
import jax.numpy as jnp
import numpy as np
from jax.experimental import pallas as pl
from jax.experimental.pallas import tpu as pltpu


def _round_up(x, m):
    return ((x + m - 1) // m) * m


def encoder_block_kernel(ftext_ref, fimm_ref,
                         wfc_ref, bfc_ref,
                         watt_ref, batt_ref,
                         wv_ref, bv_ref,
                         w1_ref, b1_ref,
                         w2_ref, b2_ref,
                         g1_ref, be1_ref,
                         g2_ref, be2_ref,
                         out_text_ref, out_imm_ref,
                         *, block_rows, compute_dtype, eps=1e-5):
    TM = block_rows

    def dot(x, w_ref):
        # Weights are stored (in, out) and pre-cast in the wrapper; read at the
        # use site so live ranges stay short.  f32 accumulation on the MXU.
        return jnp.dot(x.astype(compute_dtype), w_ref[...],
                       preferred_element_type=jnp.float32)

    def layer_norm(x, g_ref, b_ref):
        m = jnp.mean(x, axis=-1, keepdims=True)
        c = x - m
        var = jnp.mean(c * c, axis=-1, keepdims=True)
        return c * jax.lax.rsqrt(var + eps) * g_ref[...] + b_ref[...]

    def feed_forward(x):
        h = jnp.maximum(dot(x, w1_ref) + b1_ref[...], 0.0)
        return dot(h, w2_ref) + b2_ref[...]

    # Stack the text/image row blocks: the shared fc projection and the two
    # independent flag=True attention calls become ONE (2*TM, E) matmul each.
    f2 = jnp.concatenate([ftext_ref[...], fimm_ref[...]], axis=0)   # (2TM, E)
    h2 = dot(f2, wfc_ref) + bfc_ref[...]                            # self.fc
    a2 = dot(h2, watt_ref) + batt_ref[...]                          # attention(h, flag=True), folded
    h_text, h_imm = h2[:TM], h2[TM:]
    a_text, a_imm = a2[:TM], a2[TM:]

    # --- text branch ---
    x = layer_norm(a_text + h_text, g1_ref, be1_ref)                # dropout == identity
    out_text = layer_norm(feed_forward(x) + x, g2_ref, be2_ref)
    out_text_ref[...] = out_text.astype(out_text_ref.dtype)

    # --- image branch ---
    qv = dot(out_text, wv_ref) + bv_ref[...]                        # attention(out_text, flag=False)
    q_imm = qv + h_imm
    y = layer_norm(a_imm + q_imm, g1_ref, be1_ref)
    out_imm = layer_norm(feed_forward(y) + y, g2_ref, be2_ref)
    out_imm_ref[...] = out_imm.astype(out_imm_ref.dtype)


def encoder_selfatt_transblock(f_imm, f_text, mask, params, *, heads,
                               compute_dtype=jnp.bfloat16,
                               out_dtype=jnp.float32,
                               block_rows=None,
                               weight_buffering=None):
    """Pallas forward of Encoder_SelfAtt_transBlock (features precomputed)."""
    del mask  # provably has no effect on the output (see header comment)
    N, E = f_text.shape
    assert f_imm.shape == (N, E)

    if block_rows is None:
        if N <= 256:
            block_rows = _round_up(N, 8)                 # single block (overhead-dominated regime)
        elif N <= 2048:
            block_rows = _round_up(pl.cdiv(N, 2), 8)     # >= 2 grid steps -> both v7x TCs get work
        else:
            block_rows = 1024
    TM = int(block_rows)
    grid = (pl.cdiv(N, TM),)

    cd = compute_dtype
    f32 = jnp.float32

    # Streamed activations in compute dtype (halves input DMA when bf16).
    ft = f_text.astype(cd)
    fi = f_imm.astype(cd)

    # Pre-transpose weights to (in, out); fold `heads` into the value
    # projection, then fold fc_out into it (pure linear chain).
    wfc_t = params["wfc"].T.astype(cd)
    wv_t32 = (float(heads) * params["wv"]).T.astype(f32)        # heads * Wv^T
    bv_s = (float(heads) * params["bv"]).astype(f32)            # heads * bv
    wo_t32 = params["wo"].T.astype(f32)
    watt = (wv_t32 @ wo_t32).astype(cd)                         # folded weight
    batt = (bv_s @ wo_t32 + params["bo"]).astype(f32)           # folded bias
    wv_t = wv_t32.astype(cd)
    w1_t = params["w1"].T.astype(cd)
    w2_t = params["w2"].T.astype(cd)

    args = (ft, fi,
            wfc_t, params["bfc"].astype(f32),
            watt, batt,
            wv_t, bv_s,
            w1_t, params["b1"].astype(f32),
            w2_t, params["b2"].astype(f32),
            params["g1"].astype(f32), params["be1"].astype(f32),
            params["g2"].astype(f32), params["be2"].astype(f32))

    row_spec = pl.BlockSpec((TM, E), lambda i: (i, 0))
    out_spec = pl.BlockSpec((TM, E), lambda i: (i, 0))

    def resident(a):
        # Whole array, same block every grid step -> stays in VMEM.
        nd = a.ndim
        kwargs = {}
        if weight_buffering is not None:
            # grid-invariant index_map: a second buffer buys nothing; pass 1 to
            # single-buffer weights when E is large (v7x 64 MiB VMEM).
            kwargs["pipeline_mode"] = pl.Buffered(weight_buffering)
        return pl.BlockSpec(a.shape, lambda i, _nd=nd: (0,) * _nd, **kwargs)

    in_specs = [row_spec, row_spec] + [resident(a) for a in args[2:]]

    # Explicit VMEM budget (v5e scoped default is only 16 MiB).
    def nbytes(a):
        return int(np.prod(a.shape)) * jnp.dtype(a.dtype).itemsize
    weight_bytes = sum(nbytes(a) for a in args[2:])
    io_block_bytes = TM * E * (2 * jnp.dtype(cd).itemsize + 2 * jnp.dtype(out_dtype).itemsize)
    vmem_limit = int(min(max(4 * (weight_bytes + io_block_bytes) + (8 << 20), 16 << 20), 40 << 20))

    kernel = functools.partial(encoder_block_kernel, block_rows=TM, compute_dtype=cd)
    out_text, out_imm = pl.pallas_call(
        kernel,
        grid=grid,
        in_specs=in_specs,
        out_specs=(out_spec, out_spec),
        out_shape=(jax.ShapeDtypeStruct((N, E), out_dtype),
                   jax.ShapeDtypeStruct((N, E), out_dtype)),
        compiler_params=pltpu.CompilerParams(
            dimension_semantics=("parallel",),
            vmem_limit_bytes=vmem_limit),
    )(*args)
    return out_text, out_imm


# ----------------------------------------------------------------------------
# Pure-JAX faithful replica of the PyTorch forward (full q/k/softmax/mask path)
# ----------------------------------------------------------------------------
def _ref_self_attention(v_in, k_in, q_in, mask, p, heads, flag=True):
    N, E = q_in.shape
    D = E // heads
    v = v_in @ p["wv"].T + p["bv"]
    k = k_in @ p["wk"].T + p["bk"]
    q = q_in @ p["wq"].T + p["bq"]
    v3 = v.reshape(N, heads, D)
    k3 = k.reshape(N, heads, D)
    q3 = q.reshape(N, heads, D)
    energy = q3 * k3                                     # einsum('ijk,ijk->ijk')
    energy = jnp.where(mask.reshape(N, heads, D) == 0, jnp.float32(-1e20), energy)
    att = jax.nn.softmax(energy / (float(E) ** 0.5), axis=2)
    out = jnp.einsum("nql,nhd->nhd", att, v3).reshape(N, E)
    if flag:
        out = out @ p["wo"].T + p["bo"]
    return out


def _ref_layer_norm(x, g, b, eps=1e-5):
    m = jnp.mean(x, axis=-1, keepdims=True)
    c = x - m
    var = jnp.mean(c * c, axis=-1, keepdims=True)
    return c * jax.lax.rsqrt(var + eps) * g + b


def reference_block(f_imm, f_text, mask, p, *, heads):
    h_imm = f_imm @ p["wfc"].T + p["bfc"]
    h_text = f_text @ p["wfc"].T + p["bfc"]

    def ff(x):
        return jnp.maximum(x @ p["w1"].T + p["b1"], 0.0) @ p["w2"].T + p["b2"]

    attn_text = _ref_self_attention(h_text, h_text, h_text, mask, p, heads, True)
    x = _ref_layer_norm(attn_text + h_text, p["g1"], p["be1"])
    out_text = _ref_layer_norm(ff(x) + x, p["g2"], p["be2"])

    qv = _ref_self_attention(out_text, out_text, h_imm, mask, p, heads, False)
    q_imm = qv + h_imm
    attn_imm = _ref_self_attention(h_imm, h_imm, q_imm, mask, p, heads, True)
    y = _ref_layer_norm(attn_imm + q_imm, p["g1"], p["be1"])
    out_imm = _ref_layer_norm(ff(y) + y, p["g2"], p["be2"])
    return out_text, out_imm


if __name__ == "__main__":
    N, EMBED, HEADS, FWD_EXP = 8, 32, 4, 4               # head_dim = 8, ffn = 128

    key = jax.random.PRNGKey(0)
    keys = jax.random.split(key, 24)

    def linear_init(kw, kb, fan_in, out_f, in_f):
        bound = 1.0 / np.sqrt(fan_in)
        w = jax.random.uniform(kw, (out_f, in_f), jnp.float32, -bound, bound)
        b = jax.random.uniform(kb, (1, out_f), jnp.float32, -bound, bound)
        return w, b

    wfc, bfc = linear_init(keys[0], keys[1], EMBED, EMBED, EMBED)          # shared fc
    wv, bv = linear_init(keys[2], keys[3], EMBED, EMBED, EMBED)            # attention .values
    wk, bk = linear_init(keys[4], keys[5], EMBED, EMBED, EMBED)            # (dead compute)
    wq, bq = linear_init(keys[6], keys[7], EMBED, EMBED, EMBED)            # (dead compute)
    wo, bo = linear_init(keys[8], keys[9], EMBED, EMBED, EMBED)            # attention .fc_out
    w1, b1 = linear_init(keys[10], keys[11], EMBED, FWD_EXP * EMBED, EMBED)
    w2, b2 = linear_init(keys[12], keys[13], FWD_EXP * EMBED, EMBED, FWD_EXP * EMBED)
    g1 = 1.0 + 0.1 * jax.random.normal(keys[14], (1, EMBED), jnp.float32)
    be1 = 0.1 * jax.random.normal(keys[15], (1, EMBED), jnp.float32)
    g2 = 1.0 + 0.1 * jax.random.normal(keys[16], (1, EMBED), jnp.float32)
    be2 = 0.1 * jax.random.normal(keys[17], (1, EMBED), jnp.float32)

    params = dict(wfc=wfc, bfc=bfc, wv=wv, bv=bv, wk=wk, bk=bk, wq=wq, bq=bq,
                  wo=wo, bo=bo, w1=w1, b1=b1, w2=w2, b2=b2,
                  g1=g1, be1=be1, g2=g2, be2=be2)

    # Precomputed feature-extractor outputs (ResNet18 / LSTM not translated).
    f_imm = jax.random.normal(keys[18], (N, EMBED), jnp.float32)
    f_text = jax.random.normal(keys[19], (N, EMBED), jnp.float32)
    # 0/1 mask on the flattened (N, heads*head_dim) layout (1 = keep).
    mask = (jax.random.uniform(keys[20], (N, EMBED)) > 0.2).astype(jnp.float32)

    ref_text, ref_imm = jax.block_until_ready(
        reference_block(f_imm, f_text, mask, params, heads=HEADS))

    # Strict f32 path (matches the faithful reference tightly).
    out_text, out_imm = jax.block_until_ready(
        encoder_selfatt_transblock(f_imm, f_text, mask, params, heads=HEADS,
                                   compute_dtype=jnp.float32))
    np.testing.assert_allclose(np.asarray(out_text), np.asarray(ref_text),
                               rtol=1e-3, atol=1e-3)
    np.testing.assert_allclose(np.asarray(out_imm), np.asarray(ref_imm),
                               rtol=1e-3, atol=1e-3)

    # Default bf16-operand performance path (f32 accumulate / LayerNorm):
    # loose sanity tolerance appropriate for bf16 matmul operands.
    out_text_bf, out_imm_bf = jax.block_until_ready(
        encoder_selfatt_transblock(f_imm, f_text, mask, params, heads=HEADS))
    np.testing.assert_allclose(np.asarray(out_text_bf), np.asarray(ref_text),
                               rtol=0.0, atol=0.3)
    np.testing.assert_allclose(np.asarray(out_imm_bf), np.asarray(ref_imm),
                               rtol=0.0, atol=0.3)

    print("KERNEL_OK")
</pallas_src>

<mosaic_0001>
module attributes {stable_mosaic.version = 11 : i64} {
  func.func @encoder_block_kernel(%arg0: i32, %arg1: memref<8x32xf32, #tpu.memory_space<vmem>>, %arg2: memref<8x32xf32, #tpu.memory_space<vmem>>, %arg3: memref<32x32xf32, #tpu.memory_space<vmem>>, %arg4: memref<1x32xf32, #tpu.memory_space<vmem>>, %arg5: memref<32x32xf32, #tpu.memory_space<vmem>>, %arg6: memref<1x32xf32, #tpu.memory_space<vmem>>, %arg7: memref<32x32xf32, #tpu.memory_space<vmem>>, %arg8: memref<1x32xf32, #tpu.memory_space<vmem>>, %arg9: memref<32x128xf32, #tpu.memory_space<vmem>>, %arg10: memref<1x128xf32, #tpu.memory_space<vmem>>, %arg11: memref<128x32xf32, #tpu.memory_space<vmem>>, %arg12: memref<1x32xf32, #tpu.memory_space<vmem>>, %arg13: memref<1x32xf32, #tpu.memory_space<vmem>>, %arg14: memref<1x32xf32, #tpu.memory_space<vmem>>, %arg15: memref<1x32xf32, #tpu.memory_space<vmem>>, %arg16: memref<1x32xf32, #tpu.memory_space<vmem>>, %arg17: memref<8x32xf32, #tpu.memory_space<vmem>>, %arg18: memref<8x32xf32, #tpu.memory_space<vmem>>) attributes {dimension_semantics = [#tpu.dimension_semantics<parallel>], iteration_bounds = array<i64: 1>, scalar_prefetch = 0 : i64, scratch_operands = 0 : i64, tpu.core_type = #tpu.core_type<tc>, window_params = [{transform_indices = @transform_0, window_bounds = array<i64: 8, 32>}, {transform_indices = @transform_1, window_bounds = array<i64: 8, 32>}, {pipeline_mode = #tpu.pipeline_mode<synchronous>, transform_indices = @transform_2, window_bounds = array<i64: 32, 32>}, {pipeline_mode = #tpu.pipeline_mode<synchronous>, transform_indices = @transform_3, window_bounds = array<i64: 1, 32>}, {pipeline_mode = #tpu.pipeline_mode<synchronous>, transform_indices = @transform_4, window_bounds = array<i64: 32, 32>}, {pipeline_mode = #tpu.pipeline_mode<synchronous>, transform_indices = @transform_5, window_bounds = array<i64: 1, 32>}, {pipeline_mode = #tpu.pipeline_mode<synchronous>, transform_indices = @transform_6, window_bounds = array<i64: 32, 32>}, {pipeline_mode = #tpu.pipeline_mode<synchronous>, transform_indices = @transform_7, window_bounds = array<i64: 1, 32>}, {pipeline_mode = #tpu.pipeline_mode<synchronous>, transform_indices = @transform_8, window_bounds = array<i64: 32, 128>}, {pipeline_mode = #tpu.pipeline_mode<synchronous>, transform_indices = @transform_9, window_bounds = array<i64: 1, 128>}, {pipeline_mode = #tpu.pipeline_mode<synchronous>, transform_indices = @transform_10, window_bounds = array<i64: 128, 32>}, {pipeline_mode = #tpu.pipeline_mode<synchronous>, transform_indices = @transform_11, window_bounds = array<i64: 1, 32>}, {pipeline_mode = #tpu.pipeline_mode<synchronous>, transform_indices = @transform_12, window_bounds = array<i64: 1, 32>}, {pipeline_mode = #tpu.pipeline_mode<synchronous>, transform_indices = @transform_13, window_bounds = array<i64: 1, 32>}, {pipeline_mode = #tpu.pipeline_mode<synchronous>, transform_indices = @transform_14, window_bounds = array<i64: 1, 32>}, {pipeline_mode = #tpu.pipeline_mode<synchronous>, transform_indices = @transform_15, window_bounds = array<i64: 1, 32>}, {transform_indices = @transform_16, window_bounds = array<i64: 8, 32>}, {transform_indices = @transform_17, window_bounds = array<i64: 8, 32>}]} {
    %c0 = arith.constant 0 : index
    %c0_0 = arith.constant 0 : index
    %0 = vector.load %arg1[%c0, %c0_0] : memref<8x32xf32, #tpu.memory_space<vmem>>, vector<8x32xf32>
    %c0_1 = arith.constant 0 : index
    %c0_2 = arith.constant 0 : index
    %1 = vector.load %arg2[%c0_1, %c0_2] : memref<8x32xf32, #tpu.memory_space<vmem>>, vector<8x32xf32>
    %2 = tpu.concatenate %0, %1 in 0 : vector<8x32xf32>, vector<8x32xf32> -> vector<16x32xf32>
    %c0_3 = arith.constant 0 : index
    %c0_4 = arith.constant 0 : index
    %3 = vector.load %arg3[%c0_3, %c0_4] : memref<32x32xf32, #tpu.memory_space<vmem>>, vector<32x32xf32>
    %cst = arith.constant dense<0.000000e+00> : vector<16x32xf32>
    %4 = tpu.matmul %2, %3, %cst {dimension_numbers = #tpu.dot_dimension_numbers<[1], [0], [0], [1], [0, 0, 1, 1], [], []>} : vector<16x32xf32>, vector<32x32xf32>, vector<16x32xf32> -> vector<16x32xf32>
    %c0_5 = arith.constant 0 : index
    %c0_6 = arith.constant 0 : index
    %5 = vector.load %arg4[%c0_5, %c0_6] : memref<1x32xf32, #tpu.memory_space<vmem>>, vector<1x32xf32>
    %6 = vector.broadcast %5 : vector<1x32xf32> to vector<16x32xf32>
    %7 = arith.addf %4, %6 : vector<16x32xf32>
    %c0_7 = arith.constant 0 : index
    %c0_8 = arith.constant 0 : index
    %8 = vector.load %arg5[%c0_7, %c0_8] : memref<32x32xf32, #tpu.memory_space<vmem>>, vector<32x32xf32>
    %cst_9 = arith.constant dense<0.000000e+00> : vector<16x32xf32>
    %9 = tpu.matmul %7, %8, %cst_9 {dimension_numbers = #tpu.dot_dimension_numbers<[1], [0], [0], [1], [0, 0, 1, 1], [], []>} : vector<16x32xf32>, vector<32x32xf32>, vector<16x32xf32> -> vector<16x32xf32>
    %c0_10 = arith.constant 0 : index
    %c0_11 = arith.constant 0 : index
    %10 = vector.load %arg6[%c0_10, %c0_11] : memref<1x32xf32, #tpu.memory_space<vmem>>, vector<1x32xf32>
    %11 = vector.broadcast %10 : vector<1x32xf32> to vector<16x32xf32>
    %12 = arith.addf %9, %11 : vector<16x32xf32>
    %13 = vector.extract_strided_slice %7 {offsets = [0, 0], sizes = [8, 32], strides = [1, 1]} : vector<16x32xf32> to vector<8x32xf32>
    %14 = vector.extract_strided_slice %7 {offsets = [8, 0], sizes = [8, 32], strides = [1, 1]} : vector<16x32xf32> to vector<8x32xf32>
    %15 = vector.extract_strided_slice %12 {offsets = [0, 0], sizes = [8, 32], strides = [1, 1]} : vector<16x32xf32> to vector<8x32xf32>
    %16 = vector.extract_strided_slice %12 {offsets = [8, 0], sizes = [8, 32], strides = [1, 1]} : vector<16x32xf32> to vector<8x32xf32>
    %17 = arith.addf %15, %13 : vector<8x32xf32>
    %cst_12 = arith.constant dense<0.000000e+00> : vector<8xf32>
    %18 = vector.multi_reduction <add>, %17, %cst_12 [1] : vector<8x32xf32> to vector<8xf32>
    %19 = vector.shape_cast %18 : vector<8xf32> to vector<8x1xf32>
    %cst_13 = arith.constant 3.200000e+01 : f32
    %20 = vector.broadcast %cst_13 : f32 to vector<8x1xf32>
    %21 = arith.divf %19, %20 : vector<8x1xf32>
    %22 = vector.broadcast %21 : vector<8x1xf32> to vector<8x32xf32>
    %23 = arith.subf %17, %22 : vector<8x32xf32>
    %24 = arith.mulf %23, %23 : vector<8x32xf32>
    %cst_14 = arith.constant dense<0.000000e+00> : vector<8xf32>
    %25 = vector.multi_reduction <add>, %24, %cst_14 [1] : vector<8x32xf32> to vector<8xf32>
    %26 = vector.shape_cast %25 : vector<8xf32> to vector<8x1xf32>
    %cst_15 = arith.constant 3.200000e+01 : f32
    %27 = vector.broadcast %cst_15 : f32 to vector<8x1xf32>
    %28 = arith.divf %26, %27 : vector<8x1xf32>
    %cst_16 = arith.constant 9.99999974E-6 : f32
    %29 = vector.broadcast %cst_16 : f32 to vector<8x1xf32>
    %30 = arith.addf %28, %29 : vector<8x1xf32>
    %31 = math.rsqrt %30 : vector<8x1xf32>
    %32 = vector.broadcast %31 : vector<8x1xf32> to vector<8x32xf32>
    %33 = arith.mulf %23, %32 : vector<8x32xf32>
    %c0_17 = arith.constant 0 : index
    %c0_18 = arith.constant 0 : index
    %34 = vector.load %arg13[%c0_17, %c0_18] : memref<1x32xf32, #tpu.memory_space<vmem>>, vector<1x32xf32>
    %35 = vector.broadcast %34 : vector<1x32xf32> to vector<8x32xf32>
    %36 = arith.mulf %33, %35 : vector<8x32xf32>
    %c0_19 = arith.constant 0 : index
    %c0_20 = arith.constant 0 : index
    %37 = vector.load %arg14[%c0_19, %c0_20] : memref<1x32xf32, #tpu.memory_space<vmem>>, vector<1x32xf32>
    %38 = vector.broadcast %37 : vector<1x32xf32> to vector<8x32xf32>
    %39 = arith.addf %36, %38 : vector<8x32xf32>
    %c0_21 = arith.constant 0 : index
    %c0_22 = arith.constant 0 : index
    %40 = vector.load %arg9[%c0_21, %c0_22] : memref<32x128xf32, #tpu.memory_space<vmem>>, vector<32x128xf32>
    %cst_23 = arith.constant dense<0.000000e+00> : vector<8x128xf32>
    %41 = tpu.matmul %39, %40, %cst_23 {dimension_numbers = #tpu.dot_dimension_numbers<[1], [0], [0], [1], [0, 0, 1, 1], [], []>} : vector<8x32xf32>, vector<32x128xf32>, vector<8x128xf32> -> vector<8x128xf32>
    %c0_24 = arith.constant 0 : index
    %c0_25 = arith.constant 0 : index
    %42 = vector.load %arg10[%c0_24, %c0_25] : memref<1x128xf32, #tpu.memory_space<vmem>>, vector<1x128xf32>
    %43 = vector.broadcast %42 : vector<1x128xf32> to vector<8x128xf32>
    %44 = arith.addf %41, %43 : vector<8x128xf32>
    %cst_26 = arith.constant 0.000000e+00 : f32
    %45 = vector.broadcast %cst_26 : f32 to vector<8x128xf32>
    %46 = arith.maximumf %44, %45 : vector<8x128xf32>
    %c0_27 = arith.constant 0 : index
    %c0_28 = arith.constant 0 : index
    %47 = vector.load %arg11[%c0_27, %c0_28] : memref<128x32xf32, #tpu.memory_space<vmem>>, vector<128x32xf32>
    %cst_29 = arith.constant dense<0.000000e+00> : vector<8x32xf32>
    %48 = tpu.matmul %46, %47, %cst_29 {dimension_numbers = #tpu.dot_dimension_numbers<[1], [0], [0], [1], [0, 0, 1, 1], [], []>} : vector<8x128xf32>, vector<128x32xf32>, vector<8x32xf32> -> vector<8x32xf32>
    %c0_30 = arith.constant 0 : index
    %c0_31 = arith.constant 0 : index
    %49 = vector.load %arg12[%c0_30, %c0_31] : memref<1x32xf32, #tpu.memory_space<vmem>>, vector<1x32xf32>
    %50 = vector.broadcast %49 : vector<1x32xf32> to vector<8x32xf32>
    %51 = arith.addf %48, %50 : vector<8x32xf32>
    %52 = arith.addf %51, %39 : vector<8x32xf32>
    %cst_32 = arith.constant dense<0.000000e+00> : vector<8xf32>
    %53 = vector.multi_reduction <add>, %52, %cst_32 [1] : vector<8x32xf32> to vector<8xf32>
    %54 = vector.shape_cast %53 : vector<8xf32> to vector<8x1xf32>
    %cst_33 = arith.constant 3.200000e+01 : f32
    %55 = vector.broadcast %cst_33 : f32 to vector<8x1xf32>
    %56 = arith.divf %54, %55 : vector<8x1xf32>
    %57 = vector.broadcast %56 : vector<8x1xf32> to vector<8x32xf32>
    %58 = arith.subf %52, %57 : vector<8x32xf32>
    %59 = arith.mulf %58, %58 : vector<8x32xf32>
    %cst_34 = arith.constant dense<0.000000e+00> : vector<8xf32>
    %60 = vector.multi_reduction <add>, %59, %cst_34 [1] : vector<8x32xf32> to vector<8xf32>
    %61 = vector.shape_cast %60 : vector<8xf32> to vector<8x1xf32>
    %cst_35 = arith.constant 3.200000e+01 : f32
    %62 = vector.broadcast %cst_35 : f32 to vector<8x1xf32>
    %63 = arith.divf %61, %62 : vector<8x1xf32>
    %cst_36 = arith.constant 9.99999974E-6 : f32
    %64 = vector.broadcast %cst_36 : f32 to vector<8x1xf32>
    %65 = arith.addf %63, %64 : vector<8x1xf32>
    %66 = math.rsqrt %65 : vector<8x1xf32>
    %67 = vector.broadcast %66 : vector<8x1xf32> to vector<8x32xf32>
    %68 = arith.mulf %58, %67 : vector<8x32xf32>
    %c0_37 = arith.constant 0 : index
    %c0_38 = arith.constant 0 : index
    %69 = vector.load %arg15[%c0_37, %c0_38] : memref<1x32xf32, #tpu.memory_space<vmem>>, vector<1x32xf32>
    %70 = vector.broadcast %69 : vector<1x32xf32> to vector<8x32xf32>
    %71 = arith.mulf %68, %70 : vector<8x32xf32>
    %c0_39 = arith.constant 0 : index
    %c0_40 = arith.constant 0 : index
    %72 = vector.load %arg16[%c0_39, %c0_40] : memref<1x32xf32, #tpu.memory_space<vmem>>, vector<1x32xf32>
    %73 = vector.broadcast %72 : vector<1x32xf32> to vector<8x32xf32>
    %74 = arith.addf %71, %73 : vector<8x32xf32>
    %c0_41 = arith.constant 0 : index
    %c0_42 = arith.constant 0 : index
    %75 = vector.load %arg17[%c0_41, %c0_42] : memref<8x32xf32, #tpu.memory_space<vmem>>, vector<8x32xf32>
    tpu.vector_store %arg17[%c0_41, %c0_42], %74 {strides = array<i32>} : memref<8x32xf32, #tpu.memory_space<vmem>>, vector<8x32xf32>,
    %c0_43 = arith.constant 0 : index
    %c0_44 = arith.constant 0 : index
    %76 = vector.load %arg7[%c0_43, %c0_44] : memref<32x32xf32, #tpu.memory_space<vmem>>, vector<32x32xf32>
    %cst_45 = arith.constant dense<0.000000e+00> : vector<8x32xf32>
    %77 = tpu.matmul %74, %76, %cst_45 {dimension_numbers = #tpu.dot_dimension_numbers<[1], [0], [0], [1], [0, 0, 1, 1], [], []>} : vector<8x32xf32>, vector<32x32xf32>, vector<8x32xf32> -> vector<8x32xf32>
    %c0_46 = arith.constant 0 : index
    %c0_47 = arith.constant 0 : index
    %78 = vector.load %arg8[%c0_46, %c0_47] : memref<1x32xf32, #tpu.memory_space<vmem>>, vector<1x32xf32>
    %79 = vector.broadcast %78 : vector<1x32xf32> to vector<8x32xf32>
    %80 = arith.addf %77, %79 : vector<8x32xf32>
    %81 = arith.addf %80, %14 : vector<8x32xf32>
    %82 = arith.addf %16, %81 : vector<8x32xf32>
    %cst_48 = arith.constant dense<0.000000e+00> : vector<8xf32>
    %83 = vector.multi_reduction <add>, %82, %cst_48 [1] : vector<8x32xf32> to vector<8xf32>
    %84 = vector.shape_cast %83 : vector<8xf32> to vector<8x1xf32>
    %cst_49 = arith.constant 3.200000e+01 : f32
    %85 = vector.broadcast %cst_49 : f32 to vector<8x1xf32>
    %86 = arith.divf %84, %85 : vector<8x1xf32>
    %87 = vector.broadcast %86 : vector<8x1xf32> to vector<8x32xf32>
    %88 = arith.subf %82, %87 : vector<8x32xf32>
    %89 = arith.mulf %88, %88 : vector<8x32xf32>
    %cst_50 = arith.constant dense<0.000000e+00> : vector<8xf32>
    %90 = vector.multi_reduction <add>, %89, %cst_50 [1] : vector<8x32xf32> to vector<8xf32>
    %91 = vector.shape_cast %90 : vector<8xf32> to vector<8x1xf32>
    %cst_51 = arith.constant 3.200000e+01 : f32
    %92 = vector.broadcast %cst_51 : f32 to vector<8x1xf32>
    %93 = arith.divf %91, %92 : vector<8x1xf32>
    %cst_52 = arith.constant 9.99999974E-6 : f32
    %94 = vector.broadcast %cst_52 : f32 to vector<8x1xf32>
    %95 = arith.addf %93, %94 : vector<8x1xf32>
    %96 = math.rsqrt %95 : vector<8x1xf32>
    %97 = vector.broadcast %96 : vector<8x1xf32> to vector<8x32xf32>
    %98 = arith.mulf %88, %97 : vector<8x32xf32>
    %c0_53 = arith.constant 0 : index
    %c0_54 = arith.constant 0 : index
    %99 = vector.load %arg13[%c0_53, %c0_54] : memref<1x32xf32, #tpu.memory_space<vmem>>, vector<1x32xf32>
    %100 = vector.broadcast %99 : vector<1x32xf32> to vector<8x32xf32>
    %101 = arith.mulf %98, %100 : vector<8x32xf32>
    %c0_55 = arith.constant 0 : index
    %c0_56 = arith.constant 0 : index
    %102 = vector.load %arg14[%c0_55, %c0_56] : memref<1x32xf32, #tpu.memory_space<vmem>>, vector<1x32xf32>
    %103 = vector.broadcast %102 : vector<1x32xf32> to vector<8x32xf32>
    %104 = arith.addf %101, %103 : vector<8x32xf32>
    %c0_57 = arith.constant 0 : index
    %c0_58 = arith.constant 0 : index
    %105 = vector.load %arg9[%c0_57, %c0_58] : memref<32x128xf32, #tpu.memory_space<vmem>>, vector<32x128xf32>
    %cst_59 = arith.constant dense<0.000000e+00> : vector<8x128xf32>
    %106 = tpu.matmul %104, %105, %cst_59 {dimension_numbers = #tpu.dot_dimension_numbers<[1], [0], [0], [1], [0, 0, 1, 1], [], []>} : vector<8x32xf32>, vector<32x128xf32>, vector<8x128xf32> -> vector<8x128xf32>
    %c0_60 = arith.constant 0 : index
    %c0_61 = arith.constant 0 : index
    %107 = vector.load %arg10[%c0_60, %c0_61] : memref<1x128xf32, #tpu.memory_space<vmem>>, vector<1x128xf32>
    %108 = vector.broadcast %107 : vector<1x128xf32> to vector<8x128xf32>
    %109 = arith.addf %106, %108 : vector<8x128xf32>
    %cst_62 = arith.constant 0.000000e+00 : f32
    %110 = vector.broadcast %cst_62 : f32 to vector<8x128xf32>
    %111 = arith.maximumf %109, %110 : vector<8x128xf32>
    %c0_63 = arith.constant 0 : index
    %c0_64 = arith.constant 0 : index
    %112 = vector.load %arg11[%c0_63, %c0_64] : memref<128x32xf32, #tpu.memory_space<vmem>>, vector<128x32xf32>
    %cst_65 = arith.constant dense<0.000000e+00> : vector<8x32xf32>
    %113 = tpu.matmul %111, %112, %cst_65 {dimension_numbers = #tpu.dot_dimension_numbers<[1], [0], [0], [1], [0, 0, 1, 1], [], []>} : vector<8x128xf32>, vector<128x32xf32>, vector<8x32xf32> -> vector<8x32xf32>
    %c0_66 = arith.constant 0 : index
    %c0_67 = arith.constant 0 : index
    %114 = vector.load %arg12[%c0_66, %c0_67] : memref<1x32xf32, #tpu.memory_space<vmem>>, vector<1x32xf32>
    %115 = vector.broadcast %114 : vector<1x32xf32> to vector<8x32xf32>
    %116 = arith.addf %113, %115 : vector<8x32xf32>
    %117 = arith.addf %116, %104 : vector<8x32xf32>
    %cst_68 = arith.constant dense<0.000000e+00> : vector<8xf32>
    %118 = vector.multi_reduction <add>, %117, %cst_68 [1] : vector<8x32xf32> to vector<8xf32>
    %119 = vector.shape_cast %118 : vector<8xf32> to vector<8x1xf32>
    %cst_69 = arith.constant 3.200000e+01 : f32
    %120 = vector.broadcast %cst_69 : f32 to vector<8x1xf32>
    %121 = arith.divf %119, %120 : vector<8x1xf32>
    %122 = vector.broadcast %121 : vector<8x1xf32> to vector<8x32xf32>
    %123 = arith.subf %117, %122 : vector<8x32xf32>
    %124 = arith.mulf %123, %123 : vector<8x32xf32>
    %cst_70 = arith.constant dense<0.000000e+00> : vector<8xf32>
    %125 = vector.multi_reduction <add>, %124, %cst_70 [1] : vector<8x32xf32> to vector<8xf32>
    %126 = vector.shape_cast %125 : vector<8xf32> to vector<8x1xf32>
    %cst_71 = arith.constant 3.200000e+01 : f32
    %127 = vector.broadcast %cst_71 : f32 to vector<8x1xf32>
    %128 = arith.divf %126, %127 : vector<8x1xf32>
    %cst_72 = arith.constant 9.99999974E-6 : f32
    %129 = vector.broadcast %cst_72 : f32 to vector<8x1xf32>
    %130 = arith.addf %128, %129 : vector<8x1xf32>
    %131 = math.rsqrt %130 : vector<8x1xf32>
    %132 = vector.broadcast %131 : vector<8x1xf32> to vector<8x32xf32>
    %133 = arith.mulf %123, %132 : vector<8x32xf32>
    %c0_73 = arith.constant 0 : index
    %c0_74 = arith.constant 0 : index
    %134 = vector.load %arg15[%c0_73, %c0_74] : memref<1x32xf32, #tpu.memory_space<vmem>>, vector<1x32xf32>
    %135 = vector.broadcast %134 : vector<1x32xf32> to vector<8x32xf32>
    %136 = arith.mulf %133, %135 : vector<8x32xf32>
    %c0_75 = arith.constant 0 : index
    %c0_76 = arith.constant 0 : index
    %137 = vector.load %arg16[%c0_75, %c0_76] : memref<1x32xf32, #tpu.memory_space<vmem>>, vector<1x32xf32>
    %138 = vector.broadcast %137 : vector<1x32xf32> to vector<8x32xf32>
    %139 = arith.addf %136, %138 : vector<8x32xf32>
    %c0_77 = arith.constant 0 : index
    %c0_78 = arith.constant 0 : index
    %140 = vector.load %arg18[%c0_77, %c0_78] : memref<8x32xf32, #tpu.memory_space<vmem>>, vector<8x32xf32>
    tpu.vector_store %arg18[%c0_77, %c0_78], %139 {strides = array<i32>} : memref<8x32xf32, #tpu.memory_space<vmem>>, vector<8x32xf32>,
    return
  }
  func.func @transform_0(%arg0: i32) -> (i32, i32) {
    %c0_i32 = arith.constant 0 : i32
    %c0_i32_0 = arith.constant 0 : i32
    return %arg0, %c0_i32 : i32, i32
  }
  func.func @transform_1(%arg0: i32) -> (i32, i32) {
    %c0_i32 = arith.constant 0 : i32
    %c0_i32_0 = arith.constant 0 : i32
    return %arg0, %c0_i32 : i32, i32
  }
  func.func @transform_2(%arg0: i32) -> (i32, i32) {
    %c0_i32 = arith.constant 0 : i32
    %c0_i32_0 = arith.constant 0 : i32
    %c0_i32_1 = arith.constant 0 : i32
    return %c0_i32, %c0_i32_0 : i32, i32
  }
  func.func @transform_3(%arg0: i32) -> (i32, i32) {
    %c0_i32 = arith.constant 0 : i32
    %c0_i32_0 = arith.constant 0 : i32
    %c0_i32_1 = arith.constant 0 : i32
    return %c0_i32, %c0_i32_0 : i32, i32
  }
  func.func @transform_4(%arg0: i32) -> (i32, i32) {
    %c0_i32 = arith.constant 0 : i32
    %c0_i32_0 = arith.constant 0 : i32
    %c0_i32_1 = arith.constant 0 : i32
    return %c0_i32, %c0_i32_0 : i32, i32
  }
  func.func @transform_5(%arg0: i32) -> (i32, i32) {
    %c0_i32 = arith.constant 0 : i32
    %c0_i32_0 = arith.constant 0 : i32
    %c0_i32_1 = arith.constant 0 : i32
    return %c0_i32, %c0_i32_0 : i32, i32
  }
  func.func @transform_6(%arg0: i32) -> (i32, i32) {
    %c0_i32 = arith.constant 0 : i32
    %c0_i32_0 = arith.constant 0 : i32
    %c0_i32_1 = arith.constant 0 : i32
    return %c0_i32, %c0_i32_0 : i32, i32
  }
  func.func @transform_7(%arg0: i32) -> (i32, i32) {
    %c0_i32 = arith.constant 0 : i32
    %c0_i32_0 = arith.constant 0 : i32
    %c0_i32_1 = arith.constant 0 : i32
    return %c0_i32, %c0_i32_0 : i32, i32
  }
  func.func @transform_8(%arg0: i32) -> (i32, i32) {
    %c0_i32 = arith.constant 0 : i32
    %c0_i32_0 = arith.constant 0 : i32
    %c0_i32_1 = arith.constant 0 : i32
    return %c0_i32, %c0_i32_0 : i32, i32
  }
  func.func @transform_9(%arg0: i32) -> (i32, i32) {
    %c0_i32 = arith.constant 0 : i32
    %c0_i32_0 = arith.constant 0 : i32
    %c0_i32_1 = arith.constant 0 : i32
    return %c0_i32, %c0_i32_0 : i32, i32
  }
  func.func @transform_10(%arg0: i32) -> (i32, i32) {
    %c0_i32 = arith.constant 0 : i32
    %c0_i32_0 = arith.constant 0 : i32
    %c0_i32_1 = arith.constant 0 : i32
    return %c0_i32, %c0_i32_0 : i32, i32
  }
  func.func @transform_11(%arg0: i32) -> (i32, i32) {
    %c0_i32 = arith.constant 0 : i32
    %c0_i32_0 = arith.constant 0 : i32
    %c0_i32_1 = arith.constant 0 : i32
    return %c0_i32, %c0_i32_0 : i32, i32
  }
  func.func @transform_12(%arg0: i32) -> (i32, i32) {
    %c0_i32 = arith.constant 0 : i32
    %c0_i32_0 = arith.constant 0 : i32
    %c0_i32_1 = arith.constant 0 : i32
    return %c0_i32, %c0_i32_0 : i32, i32
  }
  func.func @transform_13(%arg0: i32) -> (i32, i32) {
    %c0_i32 = arith.constant 0 : i32
    %c0_i32_0 = arith.constant 0 : i32
    %c0_i32_1 = arith.constant 0 : i32
    return %c0_i32, %c0_i32_0 : i32, i32
  }
  func.func @transform_14(%arg0: i32) -> (i32, i32) {
    %c0_i32 = arith.constant 0 : i32
    %c0_i32_0 = arith.constant 0 : i32
    %c0_i32_1 = arith.constant 0 : i32
    return %c0_i32, %c0_i32_0 : i32, i32
  }
  func.func @transform_15(%arg0: i32) -> (i32, i32) {
    %c0_i32 = arith.constant 0 : i32
    %c0_i32_0 = arith.constant 0 : i32
    %c0_i32_1 = arith.constant 0 : i32
    return %c0_i32, %c0_i32_0 : i32, i32
  }
  func.func @transform_16(%arg0: i32) -> (i32, i32) {
    %c0_i32 = arith.constant 0 : i32
    %c0_i32_0 = arith.constant 0 : i32
    return %arg0, %c0_i32 : i32, i32
  }
  func.func @transform_17(%arg0: i32) -> (i32, i32) {
    %c0_i32 = arith.constant 0 : i32
    %c0_i32_0 = arith.constant 0 : i32
    return %arg0, %c0_i32 : i32, i32
  }
}

</mosaic_0001>

<bundles_post_ra>
// kernel: tpu_custom_call.1
= control target key start
LH: loop header
LB: loop body
LE: loop exit
PB: predicated region body
PF: predicated region fallthrough
CT: control target
= control target key end

     0   :  { %s1555_s0 = inlined_call_operand.vmem [shape: f32[8,32], index: 0, kind: input, shape index: {}]   ;;  %s1556_s1 = inlined_call_operand.vmem [shape: f32[8,32], index: 1, kind: input, shape index: {}]   ;;  %s1557_s2 = inlined_call_operand.vmem [shape: f32[32,32], index: 2, kind: input, shape index: {}]   ;;  %s1558_s3 = inlined_call_operand.vmem [shape: f32[1,32], index: 3, kind: input, shape index: {}]   ;;  %s1559_s4 = inlined_call_operand.vmem [shape: f32[32,32], index: 4, kind: input, shape index: {}]   ;;  %s1560_s5 = inlined_call_operand.vmem [shape: f32[1,32], index: 5, kind: input, shape index: {}]   ;;  %s1561_s6 = inlined_call_operand.vmem [shape: f32[32,32], index: 6, kind: input, shape index: {}]   ;;  %s1562_s7 = inlined_call_operand.vmem [shape: f32[1,32], index: 7, kind: input, shape index: {}]   ;;  %s1563_s8 = inlined_call_operand.vmem [shape: f32[32,128], index: 8, kind: input, shape index: {}]   ;;  %s1564_s9 = inlined_call_operand.vmem [shape: f32[1,128], index: 9, kind: input, shape index: {}]   ;;  %s1565_s10 = inlined_call_operand.vmem [shape: f32[128,32], index: 10, kind: input, shape index: {}]   ;;  %s1566_s11 = inlined_call_operand.vmem [shape: f32[1,32], index: 11, kind: input, shape index: {}]   ;;  %s1567_s12 = inlined_call_operand.vmem [shape: f32[1,32], index: 12, kind: input, shape index: {}]   ;;  %s1568_s13 = inlined_call_operand.vmem [shape: f32[1,32], index: 13, kind: input, shape index: {}]   ;;  %s1569_s14 = inlined_call_operand.vmem [shape: f32[1,32], index: 14, kind: input, shape index: {}]   ;;  %s1570_s15 = inlined_call_operand.vmem [shape: f32[1,32], index: 15, kind: input, shape index: {}]   ;;  %s1571_s16 = inlined_call_operand.hbm [shape: f32[8,32], index: 16, kind: output, shape index: {0}]   ;;  %s1572_s17 = inlined_call_operand.hbm [shape: f32[8,32], index: 17, kind: output, shape index: {1}]  }
   0x1   :  { %1573 = sst [smem:[#allocation8_spill]] %s1555_s0 }
   0x2   :  { %1574 = sst [smem:[#allocation9_spill]] %s1556_s1 }
   0x3   :  { %23 = vsyncpa [#allocation3], 0  ;;  %v59_v0 = vld [vmem:[%s1557_s2] sm:$0xff]  ;;  %v60_v1 = vld [vmem:[%s1557_s2 + $0x8] sm:$0xff]  ;;  %vm70_vm0 = vcmask 261120   ;;  %s1575_s1 = sld [smem:[#allocation8_spill]] }
   0x4   :  { %v61_v2 = vld [vmem:[%s1557_s2 + $0x10] sm:$0xff]  ;;  %v1044_v3 = vpack.c.bf16 %v60_v1, %v59_v0  ;;  %v62_v4 = vld [vmem:[%s1557_s2 + $0x18] sm:$0xff]  ;;  %v152_v7 = vld [vmem:[%s1559_s4] sm:$0xff] }
   0x5   :  { %v1048_v6 = vpack.c.bf16 %v62_v4, %v61_v2  ;;  %v153_v8 = vld [vmem:[%s1559_s4 + $0x8] sm:$0xff] }
   0x9   :  { %v57_v5 = vld [vmem:[%s1575_s1] sm:$0xff] }
   0xa   :  { %927 = vmatprep.mubr.msk.f32.mxu1 %vm70_vm0, %v57_v5 }
   0xb   :  { %24 = vsyncpa [#allocation5], 0  ;;  %1045 = vmatprep.subr.bf16.mxu1 %v1044_v3  ;;  %v1052_v9 = vpack.c.bf16 %v153_v8, %v152_v7  ;;  %s1576_s25 = sld [smem:[#allocation9_spill]]  ;;  %v154_v11 = vld [vmem:[%s1559_s4 + $0x10] sm:$0xff]  ;;  %v155_v12 = vld [vmem:[%s1559_s4 + $0x18] sm:$0xff]  ;;  %v1187_v34 = vmov 0.0|0.0  }
   0xc   :  { %1047 = vmatpush3.bf16.msra.mxu1 %v1044_v3  ;;  %v1056_v13 = vpack.c.bf16 %v155_v12, %v154_v11  ;;  %v836_v14 = vld [vmem:[%s1558_s3] ss:$0 sm:$0xff]  ;;  %v276_v32 = vld [vmem:[%s1563_s8 + $0x8] sm:$0xff]  ;;  %v277_v33 = vld [vmem:[%s1563_s8 + $0x10] sm:$0xff]  ;;  %1060 = vmatprep.subr.bf16.mxu0 %v1187_v34  ;;  %vm1188_vm1 = vmmov 0   ;;  %v1189_v37 = vmov 0.0  }
   0xd   :  { %1049 = vmatprep.subr.bf16.mxu1 %v1048_v6  ;;  %v839_v19 = vld [vmem:[%s1560_s5] ss:$0 sm:$0xff]  ;;  %v278_v36 = vld [vmem:[%s1563_s8 + $0x18] sm:$0xff]  ;;  %949 = vmatprep.mubr.msk.f32.mxu0 %vm1188_vm1, %v1189_v37  ;;  %v361_v40 = vld [vmem:[%s1565_s10 + $0x8] sm:$0xff] }
   0xe   :  { %v275_v31 = vld [vmem:[%s1563_s8] sm:$0xff]  ;;  %v1350_v38 = vpack.c.bf16 %v278_v36, %v277_v33  ;;  %v362_v41 = vld [vmem:[%s1565_s10 + $0x10] sm:$0xff]  ;;  %v363_v43 = vld [vmem:[%s1565_s10 + $0x18] sm:$0xff] }
   0xf   :  { %v1339_v35 = vpack.c.bf16 %v276_v32, %v275_v31  ;;  %v360_v39 = vld [vmem:[%s1565_s10] sm:$0xff]  ;;  %v1370_v44 = vpack.c.bf16 %v363_v43, %v362_v41  ;;  %v365_v46 = vld [vmem:[%s1565_s10 + $0x28] sm:$0xff]  ;;  %v366_v48 = vld [vmem:[%s1565_s10 + $0x30] sm:$0xff] }
  0x10   :  { %1051 = vmatpush3.bf16.msra.mxu1 %v1048_v6  ;;  %v1364_v42 = vpack.c.bf16 %v361_v40, %v360_v39  ;;  %v364_v45 = vld [vmem:[%s1565_s10 + $0x20] sm:$0xff]  ;;  %v367_v49 = vld [vmem:[%s1565_s10 + $0x38] sm:$0xff]  ;;  %v369_v52 = vld [vmem:[%s1565_s10 + $0x48] sm:$0xff] }
  0x11   :  { %v58_v10 = vld [vmem:[%s1576_s25] sm:$0xff]  ;;  %1053 = vmatprep.subr.bf16.mxu1 %v1052_v9  ;;  %1062 = vmatpush3.bf16.msra.mxu0 %v1339_v35  ;;  %v1380_v47 = vpack.c.bf16 %v365_v46, %v364_v45  ;;  %v1390_v50 = vpack.c.bf16 %v367_v49, %v366_v48  ;;  %v370_v54 = vld [vmem:[%s1565_s10 + $0x50] sm:$0xff]  ;;  %v371_v55 = vld [vmem:[%s1565_s10 + $0x58] sm:$0xff] }
  0x12   :  { %1063 = vmatprep.subr.bf16.mxu0 %v1187_v34  ;;  %v368_v51 = vld [vmem:[%s1565_s10 + $0x40] sm:$0xff]  ;;  %v1410_v56 = vpack.c.bf16 %v371_v55, %v370_v54  ;;  %v373_v58 = vld [vmem:[%s1565_s10 + $0x68] sm:$0xff]  ;;  %v374_v5 = vld [vmem:[%s1565_s10 + $0x70] sm:$0xff] }
  0x13   :  { %928 = vmatmul.mubr.msk.f32.vlgmr.msra.gmra.mrb[0].mxu1 %vm70_vm0, %v58_v10  ;;  %v1400_v53 = vpack.c.bf16 %v369_v52, %v368_v51  ;;  %v372_v57 = vld [vmem:[%s1565_s10 + $0x60] sm:$0xff]  ;;  %v375_v6 = vld [vmem:[%s1565_s10 + $0x78] sm:$0xff] }
  0x14   :  { %1055 = vmatpush3.bf16.msra.mxu1 %v1052_v9  ;;  %v1420_v59 = vpack.c.bf16 %v373_v58, %v372_v57  ;;  %v1428_v0 = vld [vmem:[%s1567_s12] ss:$0 sm:$0xff]  ;;  %v1446_v7 = vpack.c.bf16 %v375_v6, %v374_v5 }
  0x15   :  { %1057 = vmatprep.subr.bf16.mxu1 %v1056_v13  ;;  %1065 = vmatpush3.bf16.msra.mxu0 %v1350_v38  ;;  %v1433_v2 = vld [vmem:[%s1568_s13] ss:$0 sm:$0xff] }
  0x16   :  { %1090 = vmatprep.subr.bf16.mxu0 %v1187_v34  ;;  %v1452_v8 = vld [vmem:[%s1564_s9] ss:$0 sm:$0xff] }
  0x17   :  { %v1480_v40 = vld [vmem:[%s1569_s14] ss:$0 sm:$0xff] }
  0x18   :  { %1059 = vmatpush3.bf16.msra.mxu1 %v1056_v13  ;;  %v1458_v13 = vld [vmem:[%s1566_s11] ss:$0 sm:$0xff] }
  0x19   :  { %1066 = vmatprep.subr.bf16.mxu1 %v1187_v34  ;;  %v1485_v43 = vld [vmem:[%s1570_s15] ss:$0 sm:$0xff] }
  0x1a   :  { %v849_v48 = vld [vmem:[%s1562_s7] ss:$0 sm:$0xff]  ;;  %s1190_s7 = smov [#allocation2]  }
  0x1b   :  { %s814_s15 = sshll.u32 %s1190_s7, 4  ;;  %s815_s15 = int_to_ptr.vmem [resolvable:$true] %s814_s15 }
  0x1c   :  { %s1139_s29 = scalar_lea.vmem %s815_s15, 128  ;;  %p1144_p1 = scmp.lt.s32.totalorder %s815_s15, %s815_s15 }
  0x1d   :  { %p1140_p0 = scmp.ne.s32.totalorder %s815_s15, %s1139_s29  ;;  %p1145_p2 = scmp.lt.s32.totalorder %s1139_s29, %s1139_s29 }
  0x1f   :  { %p1146_p3 = por %p1145_p2, %p1144_p1 }
  0x21   :  { %p1147_p4 = pnand %p1146_p3, %p1140_p0 }
  0xe6   :  { %v929_v15 = vpop.f32.mrb[0].mxu1 }
  0xe7   :  { %v143_v16 = vpop.f32.mrb[1].mxu1  ;;  %v1317_v18 = vadd.f32 %v929_v15, %v836_v14 }
  0xe8   :  { %v144_v17 = vadd.f32 %v836_v14, %v143_v16 }
  0xea   :  { %938 = vmatprep.mubr.msk.f32.mxu1 %vm70_vm0, %v144_v17 }
  0xeb   :  { %939 = vmatmul.mubr.msk.f32.vlgmr.msra.gmra.mrb[2].mxu1 %vm70_vm0, %v1317_v18 }
  0xec   :  { %984 = vmatprep.mubr.msk.f32.mxu1 %vm1188_vm1, %v1189_v37  ;;  %1068 = vmatpush3.bf16.msra.mxu1 %v1364_v42 }
  0xed   :  { %1069 = vmatprep.subr.bf16.mxu1 %v1187_v34 }
  0xf0   :  { %1071 = vmatpush3.bf16.msra.mxu1 %v1370_v44 }
  0xf1   :  { %1072 = vmatprep.subr.bf16.mxu1 %v1187_v34 }
  0xf4   :  { %1074 = vmatpush3.bf16.msra.mxu1 %v1380_v47 }
  0xf5   :  { %1075 = vmatprep.subr.bf16.mxu1 %v1187_v34 }
  0xf8   :  { %1077 = vmatpush3.bf16.msra.mxu1 %v1390_v50 }
  0xf9   :  { %1078 = vmatprep.subr.bf16.mxu1 %v1187_v34 }
  0xfc   :  { %1080 = vmatpush3.bf16.msra.mxu1 %v1400_v53 }
  0xfd   :  { %1081 = vmatprep.subr.bf16.mxu1 %v1187_v34 }
 0x100   :  { %1083 = vmatpush3.bf16.msra.mxu1 %v1410_v56 }
 0x101   :  { %1084 = vmatprep.subr.bf16.mxu1 %v1187_v34 }
 0x104   :  { %1086 = vmatpush3.bf16.msra.mxu1 %v1420_v59 }
 0x105   :  { %1087 = vmatprep.subr.bf16.mxu1 %v1187_v34 }
 0x108   :  { %1089 = vmatpush3.bf16.msra.mxu1 %v1446_v7 }
 0x1be   :  { %v940_v20 = vpop.f32.mrb[2].mxu1 }
 0x1bf   :  { %v1325_v21 = vadd.f32 %v940_v20, %v839_v19  ;;  %v235_v22 = vpop.f32.mrb[3].mxu1 }
 0x1c0   :  { %v236_v23 = vadd.f32 %v839_v19, %v235_v22 }
 0x1c2   :  { %v244_v24 = vadd.f32 %v236_v23, %v144_v17 }
 0x1c4   :  { %v245_v25 = vsel %vm70_vm0, %v244_v24, 0.0 }
 0x1c5   :  { %246 = vadd.xlane.f32.xlu0 %v245_v25 }
 0x252   :  { %v247_v26 = vpop.xlane.xlu0 %246 }
 0x253   :  { %v249_v27 = vmul.f32 0.03125, %v247_v26  ;;  %v484_v26 = vld [vmem:[%s1561_s6] sm:$0xff] }
 0x255   :  { %v250_v28 = vsub.f32 %v244_v24, %v249_v27  ;;  %v485_v27 = vld [vmem:[%s1561_s6 + $0x8] sm:$0xff] }
 0x257   :  { %v251_v29 = vmul.f32 %v250_v28, %v250_v28 }
 0x259   :  { %v252_v30 = vsel %vm70_vm0, %v251_v29, 0.0  ;;  %v486_v29 = vld [vmem:[%s1561_s6 + $0x10] sm:$0xff] }
 0x25a   :  { %253 = vadd.xlane.f32.xlu0 %v252_v30  ;;  %v487_v30 = vld [vmem:[%s1561_s6 + $0x18] sm:$0xff] }
 0x25b   :  { %v1094_v31 = vpack.c.bf16 %v487_v30, %v486_v29 }
 0x2e7   :  { %v254_v60 = vpop.xlane.xlu0 %253 }
 0x2e8   :  { %v255_v61 = vmul.f32 0.03125, %v254_v60 }
 0x2ea   :  { %v256_v62 = vadd.f32 1e-05, %v255_v61 }
 0x2ec   :  { %1131 = vrsqrt.f32 %v256_v62 }
 0x2f6   :  { %v1132_v63 = vpop.eup %1131 }
 0x2f7   :  { %v258_v1 = vmul.f32 %v1132_v63, %v250_v28  ;;  %v1091_v28 = vpack.c.bf16 %v485_v27, %v484_v26 }
 0x2f9   :  { %v266_v3 = vmul.f32 %v1428_v0, %v258_v1 }
 0x2fb   :  { %v274_v4 = vadd.f32 %v1433_v2, %v266_v3 }
 0x2fd   :  { %950 = vmatmul.mubr.msk.f32.vlgmr.msra.gmra.mrb[0].mxu0 %vm70_vm0, %v274_v4 }
 0x2fe   :  { %995 = vmatprep.mubr.msk.f32.mxu0 %vm1188_vm1, %v1189_v37  ;;  %1092 = vmatpush3.bf16.msra.mxu0 %v1091_v28 }
 0x2ff   :  { %1093 = vmatprep.subr.bf16.mxu0 %v1187_v34 }
 0x302   :  { %1095 = vmatpush3.bf16.msra.mxu0 %v1094_v31 }
 0x303   :  { %1096 = vmatprep.subr.bf16.mxu0 %v1187_v34 }
 0x3d0   :  { %v355_v9 = vpop.f32.mrb[0].mxu0 }
 0x3d1   :  { %v356_v10 = vadd.f32 %v1452_v8, %v355_v9  ;;  %v951_v11 = vpop.f32.mrb[1].mxu0 }
 0x3d3   :  { %v359_v12 = vmax.f32 %v356_v10, 0.0 }
 0x3d5   :  { %985 = vmatmul.mubr.f32.vlgmr.msra.gmra.mrb[4].mxu1 %v359_v12 }
 0x4a8   :  { %v449_v14 = vpop.f32.mrb[4].mxu1 }
 0x4a9   :  { %v450_v15 = vadd.f32 %v1458_v13, %v449_v14  ;;  %v986_v16 = vpop.f32.mrb[5].mxu1 }
 0x4ab   :  { %v453_v17 = vadd.f32 %v450_v15, %v274_v4 }
 0x4ad   :  { %v454_v19 = vsel %vm70_vm0, %v453_v17, 0.0 }
 0x4ae   :  { %455 = vadd.xlane.f32.xlu1 %v454_v19 }
 0x53b   :  { %v456_v20 = vpop.xlane.xlu1 %455 }
 0x53c   :  { %v457_v22 = vmul.f32 0.03125, %v456_v20 }
 0x53e   :  { %v458_v23 = vsub.f32 %v453_v17, %v457_v22 }
 0x540   :  { %v459_v24 = vmul.f32 %v458_v23, %v458_v23 }
 0x542   :  { %v460_v25 = vsel %vm70_vm0, %v459_v24, 0.0 }
 0x543   :  { %461 = vadd.xlane.f32.xlu1 %v460_v25 }
 0x5d0   :  { %v462_v32 = vpop.xlane.xlu1 %461 }
 0x5d1   :  { %v463_v33 = vmul.f32 0.03125, %v462_v32 }
 0x5d3   :  { %v464_v36 = vadd.f32 1e-05, %v463_v33 }
 0x5d5   :  { %1133 = vrsqrt.f32 %v464_v36 }
 0x5df   :  { %v1134_v39 = vpop.eup %1133 }
 0x5e0   :  { %v466_v41 = vmul.f32 %v1134_v39, %v458_v23 }
 0x5e2   :  { %v474_v45 = vmul.f32 %v1480_v40, %v466_v41 }
 0x5e4   :  { %v482_v46 = vadd.f32 %v1485_v43, %v474_v45 }
 0x5e6   :  { %996 = vmatmul.mubr.msk.f32.vlgmr.msra.gmra.mrb[2].mxu0 %vm70_vm0, %v482_v46  ;;  %483 = vst.msk [vmem:[#allocation2] sm:$0xff] %vm70_vm0, %v482_v46 }
 0x5e7   :  { %1098 = vmatpush3.bf16.msra.mxu0 %v1339_v35  ;;  %1006 = vmatprep.mubr.msk.f32.mxu0 %vm1188_vm1, %v1189_v37 }
 0x5e8   :  { %1099 = vmatprep.subr.bf16.mxu0 %v1187_v34 }
 0x5eb   :  { %1101 = vmatpush3.bf16.msra.mxu0 %v1350_v38 }
 0x5ec   :  { %1102 = vmatprep.subr.bf16.mxu0 %v1187_v34 }
 0x6b9   :  { %v564_v49 = vpop.f32.mrb[2].mxu0 }
 0x6ba   :  { %v565_v51 = vadd.f32 %v849_v48, %v564_v49  ;;  %v997_v52 = vpop.f32.mrb[3].mxu0 }
 0x6bc   :  { %v568_v54 = vadd.f32 %v565_v51, %v1317_v18 }
 0x6be   :  { %v569_v35 = vadd.f32 %v568_v54, %v1325_v21 }
 0x6c0   :  { %v570_v55 = vsel %vm70_vm0, %v569_v35, 0.0 }
 0x6c1   :  { %571 = vadd.xlane.f32.xlu0 %v570_v55 }
 0x74e   :  { %v572_v57 = vpop.xlane.xlu0 %571 }
 0x74f   :  { %v573_v58 = vmul.f32 0.03125, %v572_v57 }
 0x751   :  { %v574_v60 = vsub.f32 %v569_v35, %v573_v58 }
 0x753   :  { %v575_v38 = vmul.f32 %v574_v60, %v574_v60 }
 0x755   :  { %v576_v61 = vsel %vm70_vm0, %v575_v38, 0.0 }
 0x756   :  { %577 = vadd.xlane.f32.xlu1 %v576_v61 }
 0x7e3   :  { %v578_v62 = vpop.xlane.xlu1 %577 }
 0x7e4   :  { %v579_v63 = vmul.f32 0.03125, %v578_v62 }
 0x7e6   :  { %v580_v1 = vadd.f32 1e-05, %v579_v63 }
 0x7e8   :  { %1135 = vrsqrt.f32 %v580_v1 }
 0x7f2   :  { %v1136_v3 = vpop.eup %1135 }
 0x7f3   :  { %v582_v4 = vmul.f32 %v1136_v3, %v574_v60 }
 0x7f5   :  { %v590_v18 = vmul.f32 %v1428_v0, %v582_v4 }
 0x7f7   :  { %v598_v21 = vadd.f32 %v1433_v2, %v590_v18 }
 0x7f9   :  { %1007 = vmatmul.mubr.msk.f32.vlgmr.msra.gmra.mrb[4].mxu0 %vm70_vm0, %v598_v21 }
 0x7fa   :  { %1104 = vmatpush3.bf16.msra.mxu0 %v1364_v42  ;;  %1041 = vmatprep.mubr.msk.f32.mxu0 %vm1188_vm1, %v1189_v37 }
 0x7fb   :  { %1105 = vmatprep.subr.bf16.mxu0 %v1187_v34 }
 0x7fe   :  { %1107 = vmatpush3.bf16.msra.mxu0 %v1370_v44 }
 0x7ff   :  { %1108 = vmatprep.subr.bf16.mxu0 %v1187_v34 }
 0x802   :  { %1110 = vmatpush3.bf16.msra.mxu0 %v1380_v47 }
 0x803   :  { %1111 = vmatprep.subr.bf16.mxu0 %v1187_v34 }
 0x806   :  { %1113 = vmatpush3.bf16.msra.mxu0 %v1390_v50 }
 0x807   :  { %1114 = vmatprep.subr.bf16.mxu0 %v1187_v34 }
 0x80a   :  { %1116 = vmatpush3.bf16.msra.mxu0 %v1400_v53 }
 0x80b   :  { %1117 = vmatprep.subr.bf16.mxu0 %v1187_v34 }
 0x80e   :  { %1119 = vmatpush3.bf16.msra.mxu0 %v1410_v56 }
 0x80f   :  { %1120 = vmatprep.subr.bf16.mxu0 %v1187_v34 }
 0x812   :  { %1122 = vmatpush3.bf16.msra.mxu0 %v1420_v59 }
 0x813   :  { %1123 = vmatprep.subr.bf16.mxu0 %v1187_v34 }
 0x816   :  { %1125 = vmatpush3.bf16.msra.mxu0 %v1446_v7 }
 0x8cc   :  { %v679_v37 = vpop.f32.mrb[4].mxu0 }
 0x8cd   :  { %v680_v42 = vadd.f32 %v1452_v8, %v679_v37  ;;  %v1008_v44 = vpop.f32.mrb[5].mxu0 }
 0x8cf   :  { %v683_v47 = vmax.f32 %v680_v42, 0.0 }
 0x8d1   :  { %1042 = vmatmul.mubr.f32.vlgmr.msra.gmra.mrb[6].mxu0 %v683_v47 }
 0x9a4   :  { %v773_v50 = vpop.f32.mrb[6].mxu0 }
 0x9a5   :  { %v774_v53 = vadd.f32 %v1458_v13, %v773_v50  ;;  %v1043_v0 = vpop.f32.mrb[7].mxu0 }
 0x9a7   :  { %v777_v2 = vadd.f32 %v774_v53, %v598_v21 }
 0x9a9   :  { %v778_v56 = vsel %vm70_vm0, %v777_v2, 0.0 }
 0x9aa   :  { %779 = vadd.xlane.f32.xlu0 %v778_v56 }
 0xa37   :  { %v780_v5 = vpop.xlane.xlu0 %779 }
 0xa38   :  { %v781_v59 = vmul.f32 0.03125, %v780_v5 }
 0xa3a   :  { %v782_v6 = vsub.f32 %v777_v2, %v781_v59 }
 0xa3c   :  { %v783_v34 = vmul.f32 %v782_v6, %v782_v6 }
 0xa3e   :  { %v784_v7 = vsel %vm70_vm0, %v783_v34, 0.0 }
 0xa3f   :  { %785 = vadd.xlane.f32.xlu1 %v784_v7 }
 0xa40   :  { %1150 = shalt.err (!%p1147_p4)
}
 0xa41   :  { %s1151_s18 = scalar_lea.hbm %s1571_s16, 128 }
 0xa42   :  { %p1152_p5 = scmp.ne.s32.totalorder %s1571_s16, %s1151_s18  ;;  %p1155_p6 = scmp.lt.u32.totalorder %s1151_s18, %s1571_s16 }
 0xa44   :  { %p1157_p7 = pnand %p1155_p6, %p1152_p5 }
 0xa46   :  { %1160 = shalt.err (!%p1157_p7)
}
 0xa47   :  { %817 = dma.vmem_to_hbm [thread:$0]  %s815_s15, 128, %s1571_s16, [#allocation3]  }
 0xa48   :  { %s1191_s1 = smov [#allocation4]  }
 0xa49   :  { %s824_s20 = sshll.u32 %s1191_s1, 4  ;;  %s825_s20 = int_to_ptr.vmem [resolvable:$true] %s824_s20 }
 0xa4a   :  { %s1161_s21 = scalar_lea.vmem %s825_s20, 128  ;;  %p1166_p9 = scmp.lt.s32.totalorder %s825_s20, %s825_s20 }
 0xa4b   :  { %p1162_p8 = scmp.ne.s32.totalorder %s825_s20, %s1161_s21  ;;  %p1167_p10 = scmp.lt.s32.totalorder %s1161_s21, %s1161_s21 }
 0xa4d   :  { %p1168_p11 = por %p1167_p10, %p1166_p9 }
 0xa4f   :  { %p1169_p12 = pnand %p1168_p11, %p1162_p8 }
 0xacc   :  { %v786_v8 = vpop.xlane.xlu1 %785 }
 0xacd   :  { %v787_v9 = vmul.f32 0.03125, %v786_v8 }
 0xacf   :  { %v788_v10 = vadd.f32 1e-05, %v787_v9 }
 0xad1   :  { %1137 = vrsqrt.f32 %v788_v10 }
 0xadb   :  { %v1138_v11 = vpop.eup %1137 }
 0xadc   :  { %v790_v12 = vmul.f32 %v1138_v11, %v782_v6 }
 0xade   :  { %v798_v13 = vmul.f32 %v1480_v40, %v790_v12 }
 0xae0   :  { %v806_v14 = vadd.f32 %v1485_v43, %v798_v13 }
 0xae2   :  { %807 = vst.msk [vmem:[#allocation4] sm:$0xff] %vm70_vm0, %v806_v14 }
 0xae3   :  { %1172 = shalt.err (!%p1169_p12)
}
 0xae4   :  { %s1173_s10 = scalar_lea.hbm %s1572_s17, 128 }
 0xae5   :  { %p1174_p13 = scmp.ne.s32.totalorder %s1572_s17, %s1173_s10  ;;  %p1177_p0 = scmp.lt.u32.totalorder %s1173_s10, %s1572_s17 }
 0xae7   :  { %p1179_p1 = pnand %p1177_p0, %p1174_p13 }
 0xae9   :  { %1182 = shalt.err (!%p1179_p1)
}
 0xaea   :  { %827 = dma.vmem_to_hbm [thread:$0]  %s825_s20, 128, %s1572_s17, [#allocation5]  }
 0xaeb   :  { %1183 = dma.done.wait [#allocation3], 128  }
 0xaec   :  { %1184 = vsyncadd [#allocation3], 4294967168 }
 0xaed   :  { %1185 = dma.done.wait [#allocation5], 128  }
 0xaee   :  { %1186 = vsyncadd [#allocation5], 4294967168 }
 0xaef   :  { %834 = vsyncpa [#allocation3], 1 }
 0xaf0   :  { %835 = vsyncpa [#allocation5], 1 }

</bundles_post_ra>
